<compile_context>
chip_gen: v6e
topology: v6e:2x2x1
jax: 0.10.0
libtpu: 0.0.40
codegen_flags: <defaults>
</compile_context>

<pallas_src>
import functools

import jax
import jax.numpy as jnp
from jax.experimental import pallas as pl
from jax.experimental.pallas import tpu as pltpu

LANES = 128


def _round_up(x, m):
    return (x + m - 1) // m * m


def _cdiv(a, b):
    return -(-a // b)


def _elu(x):
    # ELU with alpha=1.0 (torch.nn.ELU default). min(x, 0) keeps the exp
    # argument non-positive so the unselected branch never produces inf.
    return jnp.where(x > 0, x, jnp.exp(jnp.minimum(x, 0.0)) - 1.0)


def actor_kernel(x_ref, w1_ref, wp_ref, b_ref, out_ref, *, action_size):
    x = x_ref[...].astype(jnp.bfloat16)               # (TILE_B, state_size) bf16
    b = b_ref[...]                                     # (4, 128) f32 packed biases

    # Layer 1: Linear + ELU   (state_size -> 128), bf16 MXU inputs, f32 accum.
    h = jnp.dot(x, w1_ref[...], preferred_element_type=jnp.float32)
    h = _elu(h + b[0:1, :])

    # Layers 2 and 3: Linear + ELU (zero-padded 128 -> 128)
    for j in range(2):
        h = jnp.dot(h.astype(jnp.bfloat16), wp_ref[j],
                    preferred_element_type=jnp.float32)
        h = _elu(h + b[j + 1:j + 2, :])

    # Output layer: Linear (only the first `action_size` lanes are real)
    logits = jnp.dot(h.astype(jnp.bfloat16), wp_ref[2],
                     preferred_element_type=jnp.float32)
    logits = logits + b[3:4, :]

    # TODO(synk): add_noise branch (torch.randn_like * noise_scale) omitted;
    # default add_noise=False. If needed use pltpu.prng_seed/prng_random_bits.

    # Mask padded action lanes, numerically stable softmax (lane-dense compute).
    col = jax.lax.broadcasted_iota(jnp.int32, logits.shape, 1)
    logits = jnp.where(col < action_size, logits, -jnp.inf)
    m = jnp.max(logits, axis=-1, keepdims=True)
    e = jnp.exp(logits - m)
    denom = jnp.sum(e, axis=-1, keepdims=True)
    inv = pl.reciprocal(denom, approx=False)           # exact; (tile,1) is cheap
    # Store only the real action lanes (narrow, masked store).
    out_ref[...] = (e[:, :action_size] * inv).astype(out_ref.dtype)


def nn_actor_forward(state, packed, *, tile_b=8192, min_steps=1):
    """state: (B, state_size) float32 (or bf16). packed: dict from pack_params().

    min_steps: set >=2 on v7x so the "parallel" batch axis shards across both
    TensorCores; leave at 1 for v5e/v6e (single TC).
    """
    w1, wp, bias = packed["w1"], packed["wp"], packed["b"]
    action_size = packed["action_size"]
    B, state_size = state.shape

    # Near-even batch tiling (multiple of 8 rows), at least `min_steps` steps.
    b8 = _round_up(B, 8)
    n_steps = max(_cdiv(b8, tile_b), min_steps, 1)
    tile = _round_up(_cdiv(b8, n_steps), 8)
    n_steps = _cdiv(b8, tile)
    b_pad = n_steps * tile
    if b_pad != B:
        state = jnp.pad(state, ((0, b_pad - B), (0, 0)))

    cost = pl.CostEstimate(
        flops=int(2 * b_pad * (state_size * LANES + 3 * LANES * LANES)),
        transcendentals=int(4 * b_pad * LANES),
        bytes_accessed=int(
            state.size * state.dtype.itemsize
            + b_pad * action_size * 4
            + w1.size * w1.dtype.itemsize
            + wp.size * wp.dtype.itemsize
            + bias.size * bias.dtype.itemsize),
    )

    kernel = functools.partial(actor_kernel, action_size=action_size)
    out = pl.pallas_call(
        kernel,
        out_shape=jax.ShapeDtypeStruct((b_pad, action_size), jnp.float32),
        grid=(n_steps,),
        in_specs=[
            pl.BlockSpec((tile, state_size), lambda i: (i, 0)),    # state tile
            pl.BlockSpec((state_size, LANES), lambda i: (0, 0)),   # W1 (resident, bf16)
            pl.BlockSpec((3, LANES, LANES), lambda i: (0, 0, 0)),  # W2..W4 slab (resident, bf16)
            pl.BlockSpec((4, LANES), lambda i: (0, 0)),            # bias slab (resident, f32)
        ],
        out_specs=pl.BlockSpec((tile, action_size), lambda i: (i, 0)),
        compiler_params=pltpu.CompilerParams(
            dimension_semantics=("parallel",)),
        cost_estimate=cost,
    )(state, w1, wp, bias)
    return out[:B]


def init_params(key, state_size, action_size, hidden_layers=(128, 64, 32)):
    """Deterministic init mimicking nn.Linear default (uniform +/- 1/sqrt(fan_in)).
    Weights stored (in, out) so the kernel computes y = x @ W + b."""
    sizes = [state_size, *hidden_layers, action_size]
    params = {}
    for i, (fan_in, fan_out) in enumerate(zip(sizes[:-1], sizes[1:]), start=1):
        key, kw, kb = jax.random.split(key, 3)
        bound = 1.0 / (fan_in ** 0.5)
        params[f"w{i}"] = jax.random.uniform(
            kw, (fan_in, fan_out), jnp.float32, -bound, bound)
        params[f"b{i}"] = jax.random.uniform(
            kb, (1, fan_out), jnp.float32, -bound, bound)
    return params


def pack_params(params, state_size, action_size, hidden_layers=(128, 64, 32)):
    """Zero-pad every hidden/action width to 128 lanes; pack W2..W4 into one
    (3,128,128) bf16 slab, W1 into a (state_size,128) bf16 slab, and the four
    biases into one (4,128) f32 slab."""
    sizes = [state_size, *hidden_layers, action_size]
    assert all(s <= LANES for s in sizes[1:]), "packing assumes widths <= 128"
    h1 = hidden_layers[0]
    w1 = jnp.zeros((state_size, LANES), jnp.float32).at[:, :h1].set(params["w1"])
    wp = jnp.zeros((3, LANES, LANES), jnp.float32)
    for idx, li in enumerate((2, 3, 4)):
        w = params[f"w{li}"]
        wp = wp.at[idx, :w.shape[0], :w.shape[1]].set(w)
    bias = jnp.zeros((4, LANES), jnp.float32)
    for li in (1, 2, 3, 4):
        bi = params[f"b{li}"].reshape(-1)
        bias = bias.at[li - 1, :bi.shape[0]].set(bi)
    return {"w1": w1.astype(jnp.bfloat16), "wp": wp.astype(jnp.bfloat16),
            "b": bias, "action_size": action_size}


def reference_forward(state, params):
    """Full-f32 reference (matches the original PyTorch module)."""
    h = state
    for i in (1, 2, 3):
        h = _elu(h @ params[f"w{i}"] + params[f"b{i}"])
    logits = h @ params["w4"] + params["b4"]
    return jax.nn.softmax(logits, axis=-1)


def reference_forward_matched(state, params):
    """Precision-matched reference: bf16 matmul inputs, f32 accumulation."""
    h = state
    for i in (1, 2, 3, 4):
        w = params[f"w{i}"].astype(jnp.bfloat16)
        h = jnp.dot(h.astype(jnp.bfloat16), w,
                    preferred_element_type=jnp.float32) + params[f"b{i}"]
        if i < 4:
            h = _elu(h)
    return jax.nn.softmax(h, axis=-1)


if __name__ == "__main__":
    key = jax.random.PRNGKey(0)
    state_size, action_size, batch = 16, 4, 8
    hidden_layers = (128, 64, 32)
    kp, kx = jax.random.split(key)
    params = init_params(kp, state_size, action_size, hidden_layers)
    packed = pack_params(params, state_size, action_size, hidden_layers)
    state = jax.random.normal(kx, (batch, state_size), jnp.float32)

    out = nn_actor_forward(state, packed)
    out = jax.block_until_ready(out)

    assert out.shape == (batch, action_size)
    # Exact reciprocal -> rows sum to 1 very tightly.
    assert jnp.allclose(jnp.sum(out, axis=-1), 1.0, atol=1e-4)
    # Tight check vs a reference that mirrors the kernel's bf16-input matmuls.
    ref_m = reference_forward_matched(state, params)
    assert jnp.allclose(out, ref_m, atol=2e-3, rtol=2e-3)
    # Loose sanity check vs the full-f32 PyTorch-equivalent reference.
    ref = reference_forward(state, params)
    assert jnp.allclose(out, ref, atol=3e-2, rtol=3e-2)
    print("KERNEL_OK")
</pallas_src>

<mosaic_0001>
module attributes {stable_mosaic.version = 11 : i64} {
  func.func @actor_kernel(%arg0: i32, %arg1: memref<8x16xf32, #tpu.memory_space<vmem>>, %arg2: memref<16x128xbf16, #tpu.memory_space<vmem>>, %arg3: memref<3x128x128xbf16, #tpu.memory_space<vmem>>, %arg4: memref<4x128xf32, #tpu.memory_space<vmem>>, %arg5: memref<8x4xf32, #tpu.memory_space<vmem>>) attributes {dimension_semantics = [#tpu.dimension_semantics<parallel>], iteration_bounds = array<i64: 1>, scalar_prefetch = 0 : i64, scratch_operands = 0 : i64, tpu.core_type = #tpu.core_type<tc>, window_params = [{transform_indices = @transform_0, window_bounds = array<i64: 8, 16>}, {pipeline_mode = #tpu.pipeline_mode<synchronous>, transform_indices = @transform_1, window_bounds = array<i64: 16, 128>}, {pipeline_mode = #tpu.pipeline_mode<synchronous>, transform_indices = @transform_2, window_bounds = array<i64: 3, 128, 128>}, {pipeline_mode = #tpu.pipeline_mode<synchronous>, transform_indices = @transform_3, window_bounds = array<i64: 4, 128>}, {transform_indices = @transform_4, window_bounds = array<i64: 8, 4>}]} {
    %c0 = arith.constant 0 : index
    %c0_0 = arith.constant 0 : index
    %0 = vector.load %arg1[%c0, %c0_0] : memref<8x16xf32, #tpu.memory_space<vmem>>, vector<8x16xf32>
    %1 = arith.truncf %0 : vector<8x16xf32> to vector<8x16xbf16>
    %c0_1 = arith.constant 0 : index
    %c0_2 = arith.constant 0 : index
    %2 = vector.load %arg4[%c0_1, %c0_2] : memref<4x128xf32, #tpu.memory_space<vmem>>, vector<4x128xf32>
    %c0_3 = arith.constant 0 : index
    %c0_4 = arith.constant 0 : index
    %3 = vector.load %arg2[%c0_3, %c0_4] : memref<16x128xbf16, #tpu.memory_space<vmem>>, vector<16x128xbf16>
    %cst = arith.constant dense<0.000000e+00> : vector<8x128xf32>
    %4 = tpu.matmul %1, %3, %cst {dimension_numbers = #tpu.dot_dimension_numbers<[1], [0], [0], [1], [0, 0, 1, 1], [], []>} : vector<8x16xbf16>, vector<16x128xbf16>, vector<8x128xf32> -> vector<8x128xf32>
    %5 = vector.extract_strided_slice %2 {offsets = [0, 0], sizes = [1, 128], strides = [1, 1]} : vector<4x128xf32> to vector<1x128xf32>
    %6 = vector.broadcast %5 : vector<1x128xf32> to vector<8x128xf32>
    %7 = arith.addf %4, %6 : vector<8x128xf32>
    %cst_5 = arith.constant 0.000000e+00 : f32
    %8 = vector.broadcast %cst_5 : f32 to vector<8x128xf32>
    %9 = arith.cmpf ogt, %7, %8 : vector<8x128xf32>
    %cst_6 = arith.constant 0.000000e+00 : f32
    %10 = vector.broadcast %cst_6 : f32 to vector<8x128xf32>
    %11 = arith.minimumf %7, %10 : vector<8x128xf32>
    %12 = math.exp %11 : vector<8x128xf32>
    %cst_7 = arith.constant 1.000000e+00 : f32
    %13 = vector.broadcast %cst_7 : f32 to vector<8x128xf32>
    %14 = arith.subf %12, %13 : vector<8x128xf32>
    %15 = arith.select %9, %7, %14 : vector<8x128xi1>, vector<8x128xf32>
    %16 = arith.truncf %15 : vector<8x128xf32> to vector<8x128xbf16>
    %c0_8 = arith.constant 0 : index
    %c0_9 = arith.constant 0 : index
    %c0_10 = arith.constant 0 : index
    %17 = vector.load %arg3[%c0_8, %c0_9, %c0_10] : memref<3x128x128xbf16, #tpu.memory_space<vmem>>, vector<1x128x128xbf16>
    %18 = vector.shape_cast %17 : vector<1x128x128xbf16> to vector<128x128xbf16>
    %cst_11 = arith.constant dense<0.000000e+00> : vector<8x128xf32>
    %19 = tpu.matmul %16, %18, %cst_11 {dimension_numbers = #tpu.dot_dimension_numbers<[1], [0], [0], [1], [0, 0, 1, 1], [], []>} : vector<8x128xbf16>, vector<128x128xbf16>, vector<8x128xf32> -> vector<8x128xf32>
    %20 = vector.extract_strided_slice %2 {offsets = [1, 0], sizes = [1, 128], strides = [1, 1]} : vector<4x128xf32> to vector<1x128xf32>
    %21 = vector.broadcast %20 : vector<1x128xf32> to vector<8x128xf32>
    %22 = arith.addf %19, %21 : vector<8x128xf32>
    %cst_12 = arith.constant 0.000000e+00 : f32
    %23 = vector.broadcast %cst_12 : f32 to vector<8x128xf32>
    %24 = arith.cmpf ogt, %22, %23 : vector<8x128xf32>
    %cst_13 = arith.constant 0.000000e+00 : f32
    %25 = vector.broadcast %cst_13 : f32 to vector<8x128xf32>
    %26 = arith.minimumf %22, %25 : vector<8x128xf32>
    %27 = math.exp %26 : vector<8x128xf32>
    %cst_14 = arith.constant 1.000000e+00 : f32
    %28 = vector.broadcast %cst_14 : f32 to vector<8x128xf32>
    %29 = arith.subf %27, %28 : vector<8x128xf32>
    %30 = arith.select %24, %22, %29 : vector<8x128xi1>, vector<8x128xf32>
    %31 = arith.truncf %30 : vector<8x128xf32> to vector<8x128xbf16>
    %c1 = arith.constant 1 : index
    %c0_15 = arith.constant 0 : index
    %c0_16 = arith.constant 0 : index
    %32 = vector.load %arg3[%c1, %c0_15, %c0_16] : memref<3x128x128xbf16, #tpu.memory_space<vmem>>, vector<1x128x128xbf16>
    %33 = vector.shape_cast %32 : vector<1x128x128xbf16> to vector<128x128xbf16>
    %cst_17 = arith.constant dense<0.000000e+00> : vector<8x128xf32>
    %34 = tpu.matmul %31, %33, %cst_17 {dimension_numbers = #tpu.dot_dimension_numbers<[1], [0], [0], [1], [0, 0, 1, 1], [], []>} : vector<8x128xbf16>, vector<128x128xbf16>, vector<8x128xf32> -> vector<8x128xf32>
    %35 = vector.extract_strided_slice %2 {offsets = [2, 0], sizes = [1, 128], strides = [1, 1]} : vector<4x128xf32> to vector<1x128xf32>
    %36 = vector.broadcast %35 : vector<1x128xf32> to vector<8x128xf32>
    %37 = arith.addf %34, %36 : vector<8x128xf32>
    %cst_18 = arith.constant 0.000000e+00 : f32
    %38 = vector.broadcast %cst_18 : f32 to vector<8x128xf32>
    %39 = arith.cmpf ogt, %37, %38 : vector<8x128xf32>
    %cst_19 = arith.constant 0.000000e+00 : f32
    %40 = vector.broadcast %cst_19 : f32 to vector<8x128xf32>
    %41 = arith.minimumf %37, %40 : vector<8x128xf32>
    %42 = math.exp %41 : vector<8x128xf32>
    %cst_20 = arith.constant 1.000000e+00 : f32
    %43 = vector.broadcast %cst_20 : f32 to vector<8x128xf32>
    %44 = arith.subf %42, %43 : vector<8x128xf32>
    %45 = arith.select %39, %37, %44 : vector<8x128xi1>, vector<8x128xf32>
    %46 = arith.truncf %45 : vector<8x128xf32> to vector<8x128xbf16>
    %c2 = arith.constant 2 : index
    %c0_21 = arith.constant 0 : index
    %c0_22 = arith.constant 0 : index
    %47 = vector.load %arg3[%c2, %c0_21, %c0_22] : memref<3x128x128xbf16, #tpu.memory_space<vmem>>, vector<1x128x128xbf16>
    %48 = vector.shape_cast %47 : vector<1x128x128xbf16> to vector<128x128xbf16>
    %cst_23 = arith.constant dense<0.000000e+00> : vector<8x128xf32>
    %49 = tpu.matmul %46, %48, %cst_23 {dimension_numbers = #tpu.dot_dimension_numbers<[1], [0], [0], [1], [0, 0, 1, 1], [], []>} : vector<8x128xbf16>, vector<128x128xbf16>, vector<8x128xf32> -> vector<8x128xf32>
    %50 = vector.extract_strided_slice %2 {offsets = [3, 0], sizes = [1, 128], strides = [1, 1]} : vector<4x128xf32> to vector<1x128xf32>
    %51 = vector.broadcast %50 : vector<1x128xf32> to vector<8x128xf32>
    %52 = arith.addf %49, %51 : vector<8x128xf32>
    %53 = tpu.iota {dimensions = array<i32: 1>} : vector<8x128xi32>
    %c4_i32 = arith.constant 4 : i32
    %54 = vector.broadcast %c4_i32 : i32 to vector<8x128xi32>
    %55 = arith.cmpi slt, %53, %54 : vector<8x128xi32>
    %cst_24 = arith.constant 0xFF800000 : f32
    %56 = vector.broadcast %cst_24 : f32 to vector<8x128xf32>
    %57 = arith.select %55, %52, %56 : vector<8x128xi1>, vector<8x128xf32>
    %cst_25 = arith.constant dense<0xFF800000> : vector<8xf32>
    %58 = vector.multi_reduction <maximumf>, %57, %cst_25 [1] : vector<8x128xf32> to vector<8xf32>
    %59 = vector.shape_cast %58 : vector<8xf32> to vector<8x1xf32>
    %60 = vector.broadcast %59 : vector<8x1xf32> to vector<8x128xf32>
    %61 = arith.subf %57, %60 : vector<8x128xf32>
    %62 = math.exp %61 : vector<8x128xf32>
    %cst_26 = arith.constant dense<0.000000e+00> : vector<8xf32>
    %63 = vector.multi_reduction <add>, %62, %cst_26 [1] : vector<8x128xf32> to vector<8xf32>
    %64 = vector.shape_cast %63 : vector<8xf32> to vector<8x1xf32>
    %65 = tpu.reciprocal %64 : vector<8x1xf32> -> vector<8x1xf32>
    %66 = vector.extract_strided_slice %62 {offsets = [0, 0], sizes = [8, 4], strides = [1, 1]} : vector<8x128xf32> to vector<8x4xf32>
    %67 = vector.broadcast %65 : vector<8x1xf32> to vector<8x4xf32>
    %68 = arith.mulf %66, %67 : vector<8x4xf32>
    %c0_27 = arith.constant 0 : index
    %c0_28 = arith.constant 0 : index
    %69 = vector.load %arg5[%c0_27, %c0_28] : memref<8x4xf32, #tpu.memory_space<vmem>>, vector<8x4xf32>
    tpu.vector_store %arg5[%c0_27, %c0_28], %68 {strides = array<i32>} : memref<8x4xf32, #tpu.memory_space<vmem>>, vector<8x4xf32>,
    return
  }
  func.func @transform_0(%arg0: i32) -> (i32, i32) {
    %c0_i32 = arith.constant 0 : i32
    %c0_i32_0 = arith.constant 0 : i32
    return %arg0, %c0_i32 : i32, i32
  }
  func.func @transform_1(%arg0: i32) -> (i32, i32) {
    %c0_i32 = arith.constant 0 : i32
    %c0_i32_0 = arith.constant 0 : i32
    %c0_i32_1 = arith.constant 0 : i32
    return %c0_i32, %c0_i32_0 : i32, i32
  }
  func.func @transform_2(%arg0: i32) -> (i32, i32, i32) {
    %c0_i32 = arith.constant 0 : i32
    %c0_i32_0 = arith.constant 0 : i32
    %c0_i32_1 = arith.constant 0 : i32
    %c0_i32_2 = arith.constant 0 : i32
    return %c0_i32, %c0_i32_0, %c0_i32_1 : i32, i32, i32
  }
  func.func @transform_3(%arg0: i32) -> (i32, i32) {
    %c0_i32 = arith.constant 0 : i32
    %c0_i32_0 = arith.constant 0 : i32
    %c0_i32_1 = arith.constant 0 : i32
    return %c0_i32, %c0_i32_0 : i32, i32
  }
  func.func @transform_4(%arg0: i32) -> (i32, i32) {
    %c0_i32 = arith.constant 0 : i32
    %c0_i32_0 = arith.constant 0 : i32
    return %arg0, %c0_i32 : i32, i32
  }
}

</mosaic_0001>

<bundles_post_ra>
// kernel: tpu_custom_call.1
= control target key start
LH: loop header
LB: loop body
LE: loop exit
PB: predicated region body
PF: predicated region fallthrough
CT: control target
= control target key end

     0   :  { %9 = vsyncpa [#allocation3], 0  ;;  %s808_s0 = inlined_call_operand.hbm [shape: f32[8,16], index: 0, kind: input, shape index: {}]   ;;  %s809_s1 = inlined_call_operand.hbm [shape: bf16[16,128], index: 1, kind: input, shape index: {}]   ;;  %s810_s2 = inlined_call_operand.hbm [shape: bf16[3,128,128], index: 2, kind: input, shape index: {}]   ;;  %s811_s3 = inlined_call_operand.vmem [shape: f32[4,128], index: 3, kind: input, shape index: {}]   ;;  %s812_s4 = inlined_call_operand.vmem [shape: f32[8,4], index: 4, kind: output, shape index: {}]  }
   0x1   :  { %10 = vsyncpa [#allocation5], 0  ;;  %s714_s15 = smov [#allocation4]  }
   0x2   :  { %s26_s16 = sshll.u32 %s714_s15, 4  ;;  %s27_s16 = int_to_ptr.vmem [resolvable:$true] %s26_s16 }
   0x3   :  { %s658_s17 = scalar_lea.vmem %s27_s16, 128  ;;  %p663_p1 = scmp.lt.s32.totalorder %s27_s16, %s27_s16 }
   0x4   :  { %p659_p0 = scmp.ne.s32.totalorder %s27_s16, %s658_s17  ;;  %p664_p2 = scmp.lt.s32.totalorder %s658_s17, %s658_s17 }
   0x6   :  { %p665_p3 = por %p664_p2, %p663_p1 }
   0x8   :  { %p666_p4 = pnand %p665_p3, %p659_p0 }
   0xa   :  { %669 = shalt.err (!%p666_p4)
}
   0xb   :  { %s715_s18 = smov 64   ;;  %s716_s19 = smov 4  }
   0xc   :  { %32 = dma.hbm_to_vmem [thread:$0]  %s809_s1, 128, %s27_s16, [#allocation5], %s715_s18, %s715_s18, %s716_s19  }
   0xd   :  { %s717_s22 = smov [#allocation2]   ;;  %s718_s24 = smov [#allocation6]  }
   0xe   :  { %s17_s23 = sshll.u32 %s717_s22, 4  ;;  %s38_s25 = sshll.u32 %s718_s24, 4  ;;  %s18_s23 = int_to_ptr.vmem [resolvable:$true] %s17_s23  ;;  %s39_s25 = int_to_ptr.vmem [resolvable:$true] %s38_s25 }
   0xf   :  { %s678_s26 = scalar_lea.vmem %s18_s23, 128  ;;  %p683_p6 = scmp.lt.s32.totalorder %s18_s23, %s18_s23 }
  0x10   :  { %p679_p5 = scmp.ne.s32.totalorder %s18_s23, %s678_s26  ;;  %p684_p7 = scmp.lt.s32.totalorder %s678_s26, %s678_s26 }
  0x12   :  { %p685_p8 = por %p684_p7, %p683_p6 }
  0x14   :  { %p686_p9 = pnand %p685_p8, %p679_p5 }
  0x16   :  { %689 = shalt.err (!%p686_p9)
}
  0x17   :  { %20 = dma.hbm_to_vmem [thread:$0]  %s808_s0, 128, %s18_s23, [#allocation3]  }
  0x18   :  { %s698_s29 = scalar_lea.vmem %s39_s25, 3072  ;;  %p703_p11 = scmp.lt.s32.totalorder %s39_s25, %s39_s25 }
  0x19   :  { %p699_p10 = scmp.ne.s32.totalorder %s39_s25, %s698_s29  ;;  %p704_p12 = scmp.lt.s32.totalorder %s698_s29, %s698_s29 }
  0x1b   :  { %p705_p13 = por %p704_p12, %p703_p11 }
  0x1d   :  { %p706_p0 = pnand %p705_p13, %p699_p10 }
  0x1f   :  { %709 = shalt.err (!%p706_p0)
}
  0x20   :  { %44 = dma.hbm_to_vmem [thread:$0]  %s810_s2, 3072, %s39_s25, [#allocation5], %s715_s18, %s715_s18, %s716_s19  }
  0x21   :  { %710 = dma.done.wait [#allocation3], 128  }
  0x22   :  { %711 = vsyncadd [#allocation3], 4294967168 }
  0x23   :  { %712 = dma.done.wait [#allocation5], 3200  }
  0x24   :  { %713 = vsyncadd [#allocation5], 4294964096  ;;  %v719_v0 = vmov 0.0   ;;  %vm720_vm0 = vmmov 0   ;;  %v615_v1 = vld [vmem:[#allocation4] sm:$0xff]   ;;  %v57_v2 = vld [vmem:[#allocation2] sm:$0xff]  ;;  %v62_v14 = vlaneseq }
  0x25   :  { %542 = vmatprep.subr.bf16.mxu0 %v719_v0  ;;  %544 = vmatprep.mubr.msk.bf16.mxu0 %vm720_vm0, %v719_v0  ;;  %v58_v3 = vpack.c.bf16 %v57_v2, %v57_v2  ;;  %vm72_vm1 = vcmask 130048   ;;  %v616_v4 = vld [vmem:[#allocation6 + $0x38] sm:$0xff]   ;;  %v617_v5 = vld [vmem:[#allocation6 + $0x30] sm:$0xff]   ;;  %v618_v6 = vld [vmem:[#allocation6 + $0x28] sm:$0xff]   ;;  %vm476_vm6 = vcmask 31744  }
  0x26   :  { %548 = vmatprep.subr.bf16.mxu1 %v719_v0  ;;  %564 = vmatprep.mubr.msk.bf16.mxu1 %vm720_vm0, %v719_v0  ;;  %v619_v7 = vld [vmem:[#allocation6 + $0x20] sm:$0xff]   ;;  %v620_v8 = vld [vmem:[#allocation6 + $0x18] sm:$0xff]   ;;  %v621_v9 = vld [vmem:[#allocation6 + $0x10] sm:$0xff]   ;;  %v775_v15 = vshrl.u32 %v62_v14, 7 }
  0x27   :  { %543 = vmatpush3.bf16.msra.mxu0 %v615_v1  ;;  %549 = vmatpush3.bf16.msra.mxu1 %v616_v4  ;;  %v622_v10 = vld [vmem:[#allocation6 + $0x8] sm:$0xff]   ;;  %v623_v11 = vld [vmem:[#allocation6] sm:$0xff]   ;;  %v624_v12 = vld [vmem:[#allocation6 + $0x78] sm:$0xff]  }
  0x28   :  { %568 = vmatprep.subr.bf16.mxu0 %v719_v0  ;;  %550 = vmatprep.subr.bf16.mxu1 %v719_v0  ;;  %v625_v13 = vld [vmem:[#allocation6 + $0x70] sm:$0xff]   ;;  %v64_v16 = vsub.s32 0, %v775_v15  ;;  %v626_v30 = vld [vmem:[#allocation6 + $0x68] sm:$0xff]   ;;  %v627_v31 = vld [vmem:[#allocation6 + $0x60] sm:$0xff]   ;;  %v141_v38 = vsub.s32 1, %v775_v15  ;;  %v257_v57 = vsub.s32 2, %v775_v15 }
  0x29   :  { %v781_v17 = vld [vmem:[%s811_s3] sm:$0xf]  ;;  %v628_v32 = vld [vmem:[#allocation6 + $0x58] sm:$0xff]   ;;  %v630_v34 = vld [vmem:[#allocation6 + $0x48] sm:$0xff]  }
  0x2a   :  { %545 = vmatmul.mubr.msk.bf16.vlgmr.msra.gmra.mxu0 %vm72_vm1, %v58_v3  ;;  %v65_v18 = vrot.slane %v781_v17, %v64_v16  ;;  %v629_v33 = vld [vmem:[#allocation6 + $0x50] sm:$0xff]   ;;  %v631_v35 = vld [vmem:[#allocation6 + $0x40] sm:$0xff]   ;;  %v632_v36 = vld [vmem:[#allocation6 + $0xb8] sm:$0xff]   ;;  %v142_v39 = vrot.slane %v781_v17, %v141_v38  ;;  %v258_v58 = vrot.slane %v781_v17, %v257_v57 }
  0x2b   :  { %584 = vmatprep.mubr.msk.bf16.mxu0 %vm720_vm0, %v719_v0  ;;  %551 = vmatpush3.bf16.msra.mxu1 %v617_v5  ;;  %v633_v37 = vld [vmem:[#allocation6 + $0xb0] sm:$0xff]   ;;  %v634_v51 = vld [vmem:[#allocation6 + $0xa8] sm:$0xff]   ;;  %v635_v52 = vld [vmem:[#allocation6 + $0xa0] sm:$0xff]  }
  0x2c   :  { %552 = vmatprep.subr.bf16.mxu1 %v719_v0  ;;  %569 = vmatpush3.bf16.msra.mxu0 %v624_v12  ;;  %v636_v53 = vld [vmem:[#allocation6 + $0x98] sm:$0xff]   ;;  %v637_v54 = vld [vmem:[#allocation6 + $0x90] sm:$0xff]   ;;  %v638_v55 = vld [vmem:[#allocation6 + $0x88] sm:$0xff]  }
  0x2d   :  { %570 = vmatprep.subr.bf16.mxu0 %v719_v0  ;;  %v639_v56 = vld [vmem:[#allocation6 + $0x80] sm:$0xff]  }
  0x2f   :  { %553 = vmatpush3.bf16.msra.mxu1 %v618_v6 }
  0x30   :  { %554 = vmatprep.subr.bf16.mxu1 %v719_v0  ;;  %571 = vmatpush3.bf16.msra.mxu0 %v625_v13 }
  0x31   :  { %572 = vmatprep.subr.bf16.mxu0 %v719_v0 }
  0x33   :  { %555 = vmatpush3.bf16.msra.mxu1 %v619_v7  ;;  %v464_v7 = vand.u32 127, %v62_v14 }
  0x34   :  { %556 = vmatprep.subr.bf16.mxu1 %v719_v0  ;;  %573 = vmatpush3.bf16.msra.mxu0 %v626_v30 }
  0x35   :  { %574 = vmatprep.subr.bf16.mxu0 %v719_v0  ;;  %vm465_vm5 = vcmp.lt.s32.totalorder %v464_v7, 4 }
  0x37   :  { %557 = vmatpush3.bf16.msra.mxu1 %v620_v8 }
  0x38   :  { %558 = vmatprep.subr.bf16.mxu1 %v719_v0  ;;  %575 = vmatpush3.bf16.msra.mxu0 %v627_v31 }
  0x39   :  { %576 = vmatprep.subr.bf16.mxu0 %v719_v0 }
  0x3b   :  { %559 = vmatpush3.bf16.msra.mxu1 %v621_v9 }
  0x3c   :  { %560 = vmatprep.subr.bf16.mxu1 %v719_v0  ;;  %577 = vmatpush3.bf16.msra.mxu0 %v628_v32 }
  0x3d   :  { %578 = vmatprep.subr.bf16.mxu0 %v719_v0 }
  0x3f   :  { %561 = vmatpush3.bf16.msra.mxu1 %v622_v10 }
  0x40   :  { %562 = vmatprep.subr.bf16.mxu1 %v719_v0  ;;  %579 = vmatpush3.bf16.msra.mxu0 %v629_v33 }
  0x41   :  { %580 = vmatprep.subr.bf16.mxu0 %v719_v0 }
  0x43   :  { %563 = vmatpush3.bf16.msra.mxu1 %v623_v11 }
  0x44   :  { %588 = vmatprep.subr.bf16.mxu1 %v719_v0  ;;  %581 = vmatpush3.bf16.msra.mxu0 %v630_v34 }
  0x45   :  { %582 = vmatprep.subr.bf16.mxu0 %v719_v0 }
  0x48   :  { %583 = vmatpush3.bf16.msra.mxu0 %v631_v35 }
  0xea   :  { %v110_v19 = vpop.f32.mrf.mxu0 }
  0xeb   :  { %v111_v20 = vadd.f32 %v110_v19, %v65_v18 }
  0xec   :  { %v546_v21 = vpop.f32.mrf.mxu0 }
  0xed   :  { %v117_v22 = vmin.f32 %v111_v20, 0.0  ;;  %vm116_vm2 = vcmp.gt.f32.partialorder %v111_v20, 0.0 }
  0xee   :  { %v113_v23 = vpop.f32.mrf.mxu0 }
  0xef   :  { %v118_v24 = vmul.f32 1.442695, %v117_v22 }
  0xf0   :  { %v547_v25 = vpop.f32.mrf.mxu0 }
  0xf1   :  { %640 = vpow2.f32 %v118_v24 }
  0xfe   :  { %v641_v26 = vpop.eup %640 }
  0xff   :  { %v486_v27 = vadd.f32 -1.0, %v641_v26 }
 0x101   :  { %v121_v28 = vsel %vm116_vm2, %v111_v20, %v486_v27 }
 0x102   :  { %v122_v29 = vpack.c.bf16 %v121_v28, %v121_v28 }
 0x104   :  { %565 = vmatmul.mubr.bf16.vlgmr.msra.gmra.mxu1 %v122_v29 }
 0x105   :  { %604 = vmatprep.mubr.msk.bf16.mxu1 %vm720_vm0, %v719_v0  ;;  %589 = vmatpush3.bf16.msra.mxu1 %v632_v36 }
 0x106   :  { %590 = vmatprep.subr.bf16.mxu1 %v719_v0 }
 0x109   :  { %591 = vmatpush3.bf16.msra.mxu1 %v633_v37 }
 0x10a   :  { %592 = vmatprep.subr.bf16.mxu1 %v719_v0 }
 0x10d   :  { %593 = vmatpush3.bf16.msra.mxu1 %v634_v51 }
 0x10e   :  { %594 = vmatprep.subr.bf16.mxu1 %v719_v0 }
 0x111   :  { %595 = vmatpush3.bf16.msra.mxu1 %v635_v52 }
 0x112   :  { %596 = vmatprep.subr.bf16.mxu1 %v719_v0 }
 0x115   :  { %597 = vmatpush3.bf16.msra.mxu1 %v636_v53 }
 0x116   :  { %598 = vmatprep.subr.bf16.mxu1 %v719_v0 }
 0x119   :  { %599 = vmatpush3.bf16.msra.mxu1 %v637_v54 }
 0x11a   :  { %600 = vmatprep.subr.bf16.mxu1 %v719_v0 }
 0x11d   :  { %601 = vmatpush3.bf16.msra.mxu1 %v638_v55 }
 0x11e   :  { %602 = vmatprep.subr.bf16.mxu1 %v719_v0  ;;  %v373_v0 = vsub.s32 3, %v775_v15 }
 0x120   :  { %v374_v8 = vrot.slane %v781_v17, %v373_v0 }
 0x121   :  { %603 = vmatpush3.bf16.msra.mxu1 %v639_v56 }
 0x1c4   :  { %v225_v40 = vpop.f32.mrf.mxu1 }
 0x1c5   :  { %v226_v41 = vadd.f32 %v225_v40, %v142_v39 }
 0x1c6   :  { %v566_v42 = vpop.f32.mrf.mxu1 }
 0x1c7   :  { %v232_v43 = vmin.f32 %v226_v41, 0.0  ;;  %vm231_vm3 = vcmp.gt.f32.partialorder %v226_v41, 0.0 }
 0x1c8   :  { %v228_v44 = vpop.f32.mrf.mxu1 }
 0x1c9   :  { %v233_v45 = vmul.f32 1.442695, %v232_v43 }
 0x1ca   :  { %v567_v46 = vpop.f32.mrf.mxu1 }
 0x1cb   :  { %642 = vpow2.f32 %v233_v45 }
 0x1d8   :  { %v643_v47 = vpop.eup %642 }
 0x1d9   :  { %v495_v48 = vadd.f32 -1.0, %v643_v47 }
 0x1db   :  { %v236_v49 = vsel %vm231_vm3, %v226_v41, %v495_v48 }
 0x1dc   :  { %v237_v50 = vpack.c.bf16 %v236_v49, %v236_v49 }
 0x1de   :  { %585 = vmatmul.mubr.bf16.vlgmr.msra.gmra.mxu0 %v237_v50 }
 0x29e   :  { %v341_v59 = vpop.f32.mrf.mxu0 }
 0x29f   :  { %v342_v60 = vadd.f32 %v341_v59, %v258_v58 }
 0x2a0   :  { %v586_v61 = vpop.f32.mrf.mxu0 }
 0x2a1   :  { %v348_v62 = vmin.f32 %v342_v60, 0.0  ;;  %vm347_vm4 = vcmp.gt.f32.partialorder %v342_v60, 0.0 }
 0x2a2   :  { %v344_v63 = vpop.f32.mrf.mxu0 }
 0x2a3   :  { %v349_v1 = vmul.f32 1.442695, %v348_v62 }
 0x2a4   :  { %v587_v2 = vpop.f32.mrf.mxu0 }
 0x2a5   :  { %644 = vpow2.f32 %v349_v1 }
 0x2b2   :  { %v645_v3 = vpop.eup %644 }
 0x2b3   :  { %v504_v4 = vadd.f32 -1.0, %v645_v3 }
 0x2b5   :  { %v352_v5 = vsel %vm347_vm4, %v342_v60, %v504_v4 }
 0x2b6   :  { %v353_v6 = vpack.c.bf16 %v352_v5, %v352_v5 }
 0x2b8   :  { %605 = vmatmul.mubr.bf16.vlgmr.msra.gmra.mxu1 %v353_v6 }
 0x378   :  { %v457_v9 = vpop.f32.mrf.mxu1 }
 0x379   :  { %v458_v10 = vadd.f32 %v457_v9, %v374_v8 }
 0x37a   :  { %v606_v11 = vpop.f32.mrf.mxu1 }
 0x37b   :  { %v466_v12 = vsel %vm465_vm5, %v458_v10, -inf }
 0x37c   :  { %467 = vmax.xlane.f32.xlu0 %v466_v12  ;;  %v460_v13 = vpop.f32.mrf.mxu1 }
 0x37e   :  { %v607_v16 = vpop.f32.mrf.mxu1 }
 0x405   :  { %v468_v18 = vpop.xlane.xlu0 %467 }
 0x406   :  { %v469_v19 = vsub.f32 %v466_v12, %v468_v18 }
 0x408   :  { %v470_v20 = vmul.f32 1.442695, %v469_v19 }
 0x40a   :  { %646 = vpow2.f32 %v470_v20 }
 0x417   :  { %v647_v21 = vpop.eup %646 }
 0x418   :  { %472 = vadd.xlane.f32.xlu0 %v647_v21 }
 0x4a1   :  { %v473_v22 = vpop.xlane.xlu0 %472 }
 0x4a2   :  { %648 = vrcp.f32 %v473_v22 }
 0x4af   :  { %v649_v15 = vpop.eup %648 }
 0x4b0   :  { %v475_v14 = vmul.f32 %v649_v15, %v647_v21 }
 0x4b2   :  { %477 = vst.msk [vmem:[%s812_s4] sm:$0xff] %vm476_vm6, %v475_v14 }
 0x4b3   :  { %482 = vsyncpa [#allocation3], 1 }
 0x4b4   :  { %483 = vsyncpa [#allocation5], 1 }

</bundles_post_ra>
